<compile_context>
chip_gen: v7x
topology: tpu7x:2x2x1
jax: 0.10.0
libtpu: 0.0.40
codegen_flags: <defaults>
</compile_context>

<pallas_src>
import functools

import jax
import jax.numpy as jnp
import numpy as np
from jax.experimental import pallas as pl
from jax.experimental.pallas import tpu as pltpu


def _round_up(n, m):
    return ((n + m - 1) // m) * m


def _vmem_capacity_bytes():
    """Generation-aware VMEM capacity; falls back to the smallest (v7x-sized) value."""
    try:
        info = pltpu.get_tpu_info()
        cap = getattr(info, "vmem_capacity_bytes", None)
        if cap:
            return int(cap)
    except Exception:
        pass
    return 64 * 1024 * 1024


def _spec(shape, index_map, buffer_count=None):
    """BlockSpec helper; requests pipeline_mode=pl.Buffered(n) when supported."""
    if buffer_count is not None:
        try:
            return pl.BlockSpec(shape, index_map,
                                pipeline_mode=pl.Buffered(buffer_count))
        except Exception:
            pass  # older JAX without pipeline_mode -- fall back to default buffering
    return pl.BlockSpec(shape, index_map)


def _step_bytes(tb, tq, L, d_mp, d_kp, d_vp, fused):
    """Rough per-grid-step VMEM working-set estimate (blocks + major temporaries)."""
    n_qkv = 2 * d_kp + d_vp
    b = 0
    b += 2 * tb * tq * d_mp * 4                      # xq block (f32, double-buffered)
    b += 2 * tb * tq * d_mp * 4                      # output block (f32, double-buffered)
    if not fused:
        b += tb * L * d_mp * 2                       # xkv block (bf16, single-buffered)
        b += tb * L * (d_kp + d_vp) * 2              # hoisted K/V scratch (bf16)
    b += (d_mp * n_qkv + d_vp * d_mp) * 2            # weights (bf16, single-buffered)
    b += 2 * tb * tq * L * 4                         # scores + exp temporaries (f32)
    b += tb * tq * (n_qkv + d_vp + 2 * d_mp) * 4     # qkv / ctx / out temporaries (f32)
    return b


def _pick_tiles(B, L, d_mp, d_kp, d_vp, vmem_limit, tb=None, tq=None):
    """VMEM-aware query/batch tile selection.  Prefers a fully fused QKV path (tq == L),
    then grows the batch tile so tb*tq >= 256 (feeds the 256-wide MXU / both TCs)."""
    budget = int(vmem_limit * 0.55)
    if tq is None:
        cands = ([L] if L <= 512 else []) + [
            t for t in (512, 256, 128, 64, 32, 16, 8) if t < L and L % t == 0]
        if not cands:
            cands = [L]
        tq = cands[-1]
        for t in cands:
            if _step_bytes(1, t, L, d_mp, d_kp, d_vp, fused=(t == L)) <= budget:
                tq = t
                break
    if tb is None:
        tb = 1
        for cand in range(2, B + 1):
            if B % cand:
                continue
            if _step_bytes(cand, tq, L, d_mp, d_kp, d_vp, fused=(tq == L)) > budget:
                break
            tb = cand
            if cand * tq >= 256:
                break
    return tb, tq


def _attention_epilogue(q3, k3, v3, xq, wfc_ref, bfc_ref, gamma_ref, beta_ref, o_ref,
                        *, d_m, d_vp, eps):
    """Scores -> softmax (denominator folded into context) -> fc -> residual + LayerNorm."""
    f32 = jnp.float32
    bf16 = jnp.bfloat16
    tb, tq, d_mp = xq.shape

    # NT-form batched matmul: contracts the last dim of both operands -> no explicit k.T.
    scores = jnp.einsum("bqd,bkd->bqk", q3, k3, preferred_element_type=f32)  # (TB, TQ, L)
    m = jnp.max(scores, axis=-1, keepdims=True)
    p = jnp.exp(scores - m)
    denom = jnp.sum(p, axis=-1, keepdims=True)                               # (TB, TQ, 1)
    # TODO(synk): attention dropout (p=0.1) omitted -- eval-mode identity.

    # Unnormalized PV matmul; fold 1/denom into the (TB, TQ, d_vp) context instead of
    # normalizing the (TB, TQ, L) probability matrix (L >> d_v).
    ctx = jnp.einsum("bqk,bkd->bqd", p.astype(bf16), v3, preferred_element_type=f32)
    ctx = ctx * pl.reciprocal(denom, approx=True)

    # --- output projection ---
    out = jnp.dot(ctx.reshape(tb * tq, d_vp).astype(bf16), wfc_ref[...],
                  preferred_element_type=f32) + bfc_ref[...]
    out = out.reshape(tb, tq, d_mp)
    # TODO(synk): post-fc dropout (p=0.1) omitted -- eval-mode identity.

    # --- residual + LayerNorm over the TRUE d_m features (padded lanes of y are zero) ---
    y = out + xq
    lane = jax.lax.broadcasted_iota(jnp.int32, (1, d_mp), 1)
    feat_mask = (lane < d_m).astype(f32)                      # (1, d_mp)
    mean = jnp.sum(y, axis=-1, keepdims=True) * (1.0 / d_m)
    centered = (y - mean) * feat_mask
    var = jnp.sum(centered * centered, axis=-1, keepdims=True) * (1.0 / d_m)
    normed = centered * jax.lax.rsqrt(var + eps)
    # single fused write (keeps the epilogue store-friendly on v5e's 1 vst slot)
    o_ref[...] = (normed * gamma_ref[...] + beta_ref[...]).astype(o_ref.dtype)


def _self_attention_fused_kernel(
    xq_ref,     # (TB, L, d_mp)  whole sequence: queries, K/V source, residual (f32)
    wqkv_ref,   # (d_mp, 2*d_kp + d_vp)  bf16, [wq | wk | wv]
    bqkv_ref,   # (1, 2*d_kp + d_vp)     f32
    wfc_ref,    # (d_vp, d_mp)           bf16
    bfc_ref,    # (1, d_mp)              f32
    gamma_ref,  # (1, d_mp)              f32
    beta_ref,   # (1, d_mp)              f32
    o_ref,      # (TB, L, d_mp)
    *,
    d_m: int, d_kp: int, d_vp: int, inv_temp: float, eps: float,
):
    f32 = jnp.float32
    bf16 = jnp.bfloat16
    tb, tq, d_mp = xq_ref.shape

    xq = xq_ref[...]                                   # f32 residual
    hq = xq.reshape(tb * tq, d_mp).astype(bf16)

    # One wide bf16 MXU matmul for Q|K|V.
    qkv = jnp.dot(hq, wqkv_ref[...], preferred_element_type=f32) + bqkv_ref[...]
    # fold 1/temperature into q (O(M*d_k) multiply, not an O(L*L) divide on scores)
    q = qkv[:, :d_kp] * inv_temp
    k = qkv[:, d_kp:2 * d_kp]
    v = qkv[:, 2 * d_kp:]

    q3 = q.reshape(tb, tq, d_kp).astype(bf16)
    k3 = k.reshape(tb, tq, d_kp).astype(bf16)
    v3 = v.reshape(tb, tq, d_vp).astype(bf16)
    _attention_epilogue(q3, k3, v3, xq, wfc_ref, bfc_ref, gamma_ref, beta_ref, o_ref,
                        d_m=d_m, d_vp=d_vp, eps=eps)


def _self_attention_tiled_kernel(
    xq_ref,     # (TB, TQ, d_mp)  query rows / residual (f32)
    xkv_ref,    # (TB, L,  d_mp)  full sequence for K/V (bf16, single-buffered)
    wqkv_ref,   # (d_mp, 2*d_kp + d_vp)  bf16, [wq | wk | wv]
    bqkv_ref,   # (1, 2*d_kp + d_vp)     f32
    wfc_ref,    # (d_vp, d_mp)           bf16
    bfc_ref,    # (1, d_mp)              f32
    gamma_ref,  # (1, d_mp)              f32
    beta_ref,   # (1, d_mp)              f32
    o_ref,      # (TB, TQ, d_mp)
    k_sc,       # (TB, L, d_kp) bf16 scratch -- hoisted K projection
    v_sc,       # (TB, L, d_vp) bf16 scratch -- hoisted V projection
    *,
    d_m: int, d_kp: int, d_vp: int, inv_temp: float, eps: float,
):
    f32 = jnp.float32
    bf16 = jnp.bfloat16
    tb, tq, d_mp = xq_ref.shape
    L = xkv_ref.shape[1]

    # Hoisted K/V projection: computed once per batch tile (q axis is "arbitrary" and
    # iterates innermost), persisted in bf16 VMEM scratch across all query tiles.
    @pl.when(pl.program_id(1) == 0)
    def _():
        hkv = xkv_ref[...].reshape(tb * L, d_mp)       # already bf16
        kv = jnp.dot(hkv, wqkv_ref[:, d_kp:],
                     preferred_element_type=f32) + bqkv_ref[:, d_kp:]
        k_sc[...] = kv[:, :d_kp].reshape(tb, L, d_kp).astype(bf16)
        v_sc[...] = kv[:, d_kp:].reshape(tb, L, d_vp).astype(bf16)

    xq = xq_ref[...]                                   # f32 residual
    hq = xq.reshape(tb * tq, d_mp).astype(bf16)
    q = jnp.dot(hq, wqkv_ref[:, :d_kp], preferred_element_type=f32) + bqkv_ref[:, :d_kp]
    q = q * inv_temp
    q3 = q.reshape(tb, tq, d_kp).astype(bf16)

    _attention_epilogue(q3, k_sc[...], v_sc[...], xq, wfc_ref, bfc_ref, gamma_ref,
                        beta_ref, o_ref, d_m=d_m, d_vp=d_vp, eps=eps)


def self_attention_pallas(x, params, *, d_k, d_v, eps=1e-5, tb=None, tq=None):
    B, L, d_m = x.shape
    inv_temp = float(1.0 / np.power(d_k, 0.5))

    # lane-dense (multiple-of-128) feature dims
    d_mp = _round_up(d_m, 128)
    d_kp = _round_up(d_k, 128)
    d_vp = _round_up(d_v, 128)

    # Generation-aware VMEM budget: ~56 MiB on v7x (64 MiB), ~100 MiB on v5e/v6e (128 MiB).
    vmem_cap = _vmem_capacity_bytes()
    vmem_limit = int(max(32 * 1024 * 1024,
                         min(vmem_cap - 8 * 1024 * 1024, 100 * 1024 * 1024)))

    tb, tq = _pick_tiles(B, L, d_mp, d_kp, d_vp, vmem_limit, tb=tb, tq=tq)
    assert B % tb == 0, "batch tile must divide batch"
    assert L % tq == 0 and (tq == L or tq % 8 == 0), "bad query tile"
    nb, nq = B // tb, L // tq
    fuse_qkv = (nq == 1)   # whole sequence in one query tile -> single fused QKV matmul

    f32 = jnp.float32
    bf16 = jnp.bfloat16
    pad2 = lambda a, r, c: jnp.pad(a, ((0, r - a.shape[0]), (0, c - a.shape[1])))

    # Fused, padded, bf16 projection weights: [wq | wk | wv]  (in_features, out_features)
    w_qkv = jnp.concatenate(
        [pad2(params["wq"], d_mp, d_kp),
         pad2(params["wk"], d_mp, d_kp),
         pad2(params["wv"], d_mp, d_vp)], axis=1).astype(bf16)
    b_qkv = jnp.concatenate(
        [pad2(params["bq"], 1, d_kp),
         pad2(params["bk"], 1, d_kp),
         pad2(params["bv"], 1, d_vp)], axis=1).astype(f32)
    wfc = pad2(params["wfc"], d_vp, d_mp).astype(bf16)
    bfc = pad2(params["bfc"], 1, d_mp).astype(f32)
    gamma = pad2(params["gamma"], 1, d_mp).astype(f32)
    beta = pad2(params["beta"], 1, d_mp).astype(f32)

    x_p = jnp.pad(x, ((0, 0), (0, 0), (0, d_mp - d_m))).astype(f32)
    n_qkv = 2 * d_kp + d_vp

    if fuse_qkv:
        # --- fully fused path: no xkv operand at all (no redundant DMA) ---
        kernel = functools.partial(
            _self_attention_fused_kernel,
            d_m=d_m, d_kp=d_kp, d_vp=d_vp, inv_temp=inv_temp, eps=eps)
        # constant-index blocks -> single-buffered
        const = lambda shape: _spec(shape, lambda b: (0,) * len(shape), buffer_count=1)
        out = pl.pallas_call(
            kernel,
            out_shape=jax.ShapeDtypeStruct((B, L, d_mp), x.dtype),
            grid_spec=pltpu.PrefetchScalarGridSpec(
                num_scalar_prefetch=0,
                grid=(nb,),
                in_specs=[
                    pl.BlockSpec((tb, L, d_mp), lambda b: (b, 0, 0)),  # x (f32)
                    const((d_mp, n_qkv)),   # w_qkv (bf16)
                    const((1, n_qkv)),      # b_qkv
                    const((d_vp, d_mp)),    # wfc (bf16)
                    const((1, d_mp)),       # bfc
                    const((1, d_mp)),       # gamma
                    const((1, d_mp)),       # beta
                ],
                out_specs=pl.BlockSpec((tb, L, d_mp), lambda b: (b, 0, 0)),
            ),
            compiler_params=pltpu.CompilerParams(
                dimension_semantics=("parallel",),
                vmem_limit_bytes=vmem_limit,
            ),
        )(x_p, w_qkv, b_qkv, wfc, bfc, gamma, beta)
    else:
        # --- query-tiled path: bf16 K/V source, hoisted K/V projection in scratch ---
        x_kv = x_p.astype(bf16)   # halves the dominant (TB, L, d_mp) DMA
        kernel = functools.partial(
            _self_attention_tiled_kernel,
            d_m=d_m, d_kp=d_kp, d_vp=d_vp, inv_temp=inv_temp, eps=eps)
        const = lambda shape: _spec(shape, lambda b, q: (0,) * len(shape), buffer_count=1)
        out = pl.pallas_call(
            kernel,
            out_shape=jax.ShapeDtypeStruct((B, L, d_mp), x.dtype),
            grid_spec=pltpu.PrefetchScalarGridSpec(
                num_scalar_prefetch=0,
                grid=(nb, nq),
                in_specs=[
                    pl.BlockSpec((tb, tq, d_mp), lambda b, q: (b, q, 0)),   # queries/residual (f32)
                    _spec((tb, L, d_mp), lambda b, q: (b, 0, 0),
                          buffer_count=1),                                  # K/V source (bf16)
                    const((d_mp, n_qkv)),   # w_qkv (bf16)
                    const((1, n_qkv)),      # b_qkv
                    const((d_vp, d_mp)),    # wfc (bf16)
                    const((1, d_mp)),       # bfc
                    const((1, d_mp)),       # gamma
                    const((1, d_mp)),       # beta
                ],
                out_specs=pl.BlockSpec((tb, tq, d_mp), lambda b, q: (b, q, 0)),
                scratch_shapes=[
                    pltpu.VMEM((tb, L, d_kp), bf16),   # hoisted K projection
                    pltpu.VMEM((tb, L, d_vp), bf16),   # hoisted V projection
                ],
            ),
            compiler_params=pltpu.CompilerParams(
                dimension_semantics=("parallel", "arbitrary"),
                vmem_limit_bytes=vmem_limit,
            ),
        )(x_p, x_kv, w_qkv, b_qkv, wfc, bfc, gamma, beta)

    return out[:, :, :d_m]


def init_params(key, d_m, d_k, d_v):
    """Deterministic parameter init mirroring the PyTorch __init__ distributions."""
    ks = jax.random.split(key, 8)
    std_qk = np.sqrt(2.0 / (d_m + d_k))
    std_v = np.sqrt(2.0 / (d_m + d_v))
    bbound = 1.0 / np.sqrt(d_m)          # nn.Linear default bias init
    bbound_fc = 1.0 / np.sqrt(d_v)
    std_fc = np.sqrt(2.0 / (d_v + d_m))  # xavier_normal for fc
    params = {
        # stored as (in, out) so the kernel does x @ W
        "wq": (jax.random.normal(ks[0], (d_m, d_k)) * std_qk).astype(jnp.float32),
        "bq": jax.random.uniform(ks[1], (1, d_k), minval=-bbound, maxval=bbound).astype(jnp.float32),
        "wk": (jax.random.normal(ks[2], (d_m, d_k)) * std_qk).astype(jnp.float32),
        "bk": jax.random.uniform(ks[3], (1, d_k), minval=-bbound, maxval=bbound).astype(jnp.float32),
        "wv": (jax.random.normal(ks[4], (d_m, d_v)) * std_v).astype(jnp.float32),
        "bv": jax.random.uniform(ks[5], (1, d_v), minval=-bbound, maxval=bbound).astype(jnp.float32),
        "wfc": (jax.random.normal(ks[6], (d_v, d_m)) * std_fc).astype(jnp.float32),
        "bfc": jax.random.uniform(ks[7], (1, d_m), minval=-bbound_fc, maxval=bbound_fc).astype(jnp.float32),
        "gamma": jnp.ones((1, d_m), jnp.float32),
        "beta": jnp.zeros((1, d_m), jnp.float32),
    }
    return params


def reference_jax(x, params, *, d_k, eps=1e-5):
    """Pure-JAX f32 reference matching the PyTorch module's forward (eval mode)."""
    q = x @ params["wq"] + params["bq"][0]
    k = x @ params["wk"] + params["bk"][0]
    v = x @ params["wv"] + params["bv"][0]
    attn = jnp.einsum("bqd,bkd->bqk", q, k) / np.power(d_k, 0.5)
    attn = jax.nn.softmax(attn, axis=2)
    ctx = jnp.einsum("bqk,bkd->bqd", attn, v)
    out = ctx @ params["wfc"] + params["bfc"][0]
    y = out + x
    mean = jnp.mean(y, axis=-1, keepdims=True)
    var = jnp.mean((y - mean) ** 2, axis=-1, keepdims=True)
    return (y - mean) * jax.lax.rsqrt(var + eps) * params["gamma"][0] + params["beta"][0]


if __name__ == "__main__":
    key = jax.random.PRNGKey(0)
    kx, kp, kx2 = jax.random.split(key, 3)

    # Small shapes consistent with the module: batch=2, seq=8, d_m=32, d_k=d_v=16.
    B, L, d_m = 2, 8, 32
    d_k, d_v = 16, 16
    x = jax.random.normal(kx, (B, L, d_m), dtype=jnp.float32)
    params = init_params(kp, d_m, d_k, d_v)

    # Path 1: whole sequence in one query tile -> fully fused QKV kernel (no xkv operand).
    out = jax.block_until_ready(self_attention_pallas(x, params, d_k=d_k, d_v=d_v))
    ref = reference_jax(x, params, d_k=d_k)
    # bf16 MXU inputs (f32 accumulation) + approx reciprocal loosen the match vs pure f32.
    np.testing.assert_allclose(np.asarray(out), np.asarray(ref), atol=5e-2, rtol=5e-2)

    # Path 2: query-tiled kernel (nq > 1) -> exercises the hoisted-KV scratch branch.
    B2, L2 = 2, 32
    x2 = jax.random.normal(kx2, (B2, L2, d_m), dtype=jnp.float32)
    out2 = jax.block_until_ready(
        self_attention_pallas(x2, params, d_k=d_k, d_v=d_v, tb=1, tq=16))
    ref2 = reference_jax(x2, params, d_k=d_k)
    np.testing.assert_allclose(np.asarray(out2), np.asarray(ref2), atol=5e-2, rtol=5e-2)

    print("KERNEL_OK")
</pallas_src>

<mosaic_0001>
module attributes {stable_mosaic.version = 11 : i64} {
  func.func @_self_attention_fused_kernel(%arg0: i32, %arg1: memref<2x8x128xf32, #tpu.memory_space<vmem>>, %arg2: memref<128x384xbf16, #tpu.memory_space<vmem>>, %arg3: memref<1x384xf32, #tpu.memory_space<vmem>>, %arg4: memref<128x128xbf16, #tpu.memory_space<vmem>>, %arg5: memref<1x128xf32, #tpu.memory_space<vmem>>, %arg6: memref<1x128xf32, #tpu.memory_space<vmem>>, %arg7: memref<1x128xf32, #tpu.memory_space<vmem>>, %arg8: memref<2x8x128xf32, #tpu.memory_space<vmem>>) attributes {dimension_semantics = [#tpu.dimension_semantics<parallel>], iteration_bounds = array<i64: 1>, scalar_prefetch = 0 : i64, scratch_operands = 0 : i64, tpu.core_type = #tpu.core_type<tc>, window_params = [{transform_indices = @transform_0, window_bounds = array<i64: 2, 8, 128>}, {pipeline_mode = #tpu.pipeline_mode<synchronous>, transform_indices = @transform_1, window_bounds = array<i64: 128, 384>}, {pipeline_mode = #tpu.pipeline_mode<synchronous>, transform_indices = @transform_2, window_bounds = array<i64: 1, 384>}, {pipeline_mode = #tpu.pipeline_mode<synchronous>, transform_indices = @transform_3, window_bounds = array<i64: 128, 128>}, {pipeline_mode = #tpu.pipeline_mode<synchronous>, transform_indices = @transform_4, window_bounds = array<i64: 1, 128>}, {pipeline_mode = #tpu.pipeline_mode<synchronous>, transform_indices = @transform_5, window_bounds = array<i64: 1, 128>}, {pipeline_mode = #tpu.pipeline_mode<synchronous>, transform_indices = @transform_6, window_bounds = array<i64: 1, 128>}, {transform_indices = @transform_7, window_bounds = array<i64: 2, 8, 128>}]} {
    %c0 = arith.constant 0 : index
    %c0_0 = arith.constant 0 : index
    %c0_1 = arith.constant 0 : index
    %0 = vector.load %arg1[%c0, %c0_0, %c0_1] : memref<2x8x128xf32, #tpu.memory_space<vmem>>, vector<2x8x128xf32>
    %1 = vector.shape_cast %0 : vector<2x8x128xf32> to vector<16x128xf32>
    %2 = arith.truncf %1 : vector<16x128xf32> to vector<16x128xbf16>
    %c0_2 = arith.constant 0 : index
    %c0_3 = arith.constant 0 : index
    %3 = vector.load %arg2[%c0_2, %c0_3] : memref<128x384xbf16, #tpu.memory_space<vmem>>, vector<128x384xbf16>
    %cst = arith.constant dense<0.000000e+00> : vector<16x384xf32>
    %4 = tpu.matmul %2, %3, %cst {dimension_numbers = #tpu.dot_dimension_numbers<[1], [0], [0], [1], [0, 0, 1, 1], [], []>} : vector<16x128xbf16>, vector<128x384xbf16>, vector<16x384xf32> -> vector<16x384xf32>
    %c0_4 = arith.constant 0 : index
    %c0_5 = arith.constant 0 : index
    %5 = vector.load %arg3[%c0_4, %c0_5] : memref<1x384xf32, #tpu.memory_space<vmem>>, vector<1x384xf32>
    %6 = vector.broadcast %5 : vector<1x384xf32> to vector<16x384xf32>
    %7 = arith.addf %4, %6 : vector<16x384xf32>
    %8 = vector.extract_strided_slice %7 {offsets = [0, 0], sizes = [16, 128], strides = [1, 1]} : vector<16x384xf32> to vector<16x128xf32>
    %cst_6 = arith.constant 2.500000e-01 : f32
    %9 = vector.broadcast %cst_6 : f32 to vector<16x128xf32>
    %10 = arith.mulf %8, %9 : vector<16x128xf32>
    %11 = vector.extract_strided_slice %7 {offsets = [0, 128], sizes = [16, 128], strides = [1, 1]} : vector<16x384xf32> to vector<16x128xf32>
    %12 = vector.extract_strided_slice %7 {offsets = [0, 256], sizes = [16, 128], strides = [1, 1]} : vector<16x384xf32> to vector<16x128xf32>
    %13 = vector.shape_cast %10 : vector<16x128xf32> to vector<2x8x128xf32>
    %14 = arith.truncf %13 : vector<2x8x128xf32> to vector<2x8x128xbf16>
    %15 = vector.shape_cast %11 : vector<16x128xf32> to vector<2x8x128xf32>
    %16 = arith.truncf %15 : vector<2x8x128xf32> to vector<2x8x128xbf16>
    %17 = vector.shape_cast %12 : vector<16x128xf32> to vector<2x8x128xf32>
    %18 = arith.truncf %17 : vector<2x8x128xf32> to vector<2x8x128xbf16>
    "tpu.trace_start"() <{level = 10 : i32, message = "bqd,bkd->bqk"}> : () -> ()
    %cst_7 = arith.constant dense<0.000000e+00> : vector<2x8x8xf32>
    %19 = tpu.matmul %14, %16, %cst_7 {dimension_numbers = #tpu.dot_dimension_numbers<[2], [2], [1], [1], [0, 0, 0, 1, 1, 1], [0], [0]>} : vector<2x8x128xbf16>, vector<2x8x128xbf16>, vector<2x8x8xf32> -> vector<2x8x8xf32>
    "tpu.trace_stop"() : () -> ()
    %cst_8 = arith.constant dense<0xFF800000> : vector<2x8xf32>
    %20 = vector.multi_reduction <maximumf>, %19, %cst_8 [2] : vector<2x8x8xf32> to vector<2x8xf32>
    %21 = vector.shape_cast %20 : vector<2x8xf32> to vector<2x8x1xf32>
    %22 = vector.broadcast %21 : vector<2x8x1xf32> to vector<2x8x8xf32>
    %23 = arith.subf %19, %22 : vector<2x8x8xf32>
    %24 = math.exp %23 : vector<2x8x8xf32>
    %cst_9 = arith.constant dense<0.000000e+00> : vector<2x8xf32>
    %25 = vector.multi_reduction <add>, %24, %cst_9 [2] : vector<2x8x8xf32> to vector<2x8xf32>
    %26 = vector.shape_cast %25 : vector<2x8xf32> to vector<2x8x1xf32>
    %27 = arith.truncf %24 : vector<2x8x8xf32> to vector<2x8x8xbf16>
    "tpu.trace_start"() <{level = 10 : i32, message = "bqk,bkd->bqd"}> : () -> ()
    %cst_10 = arith.constant dense<0.000000e+00> : vector<2x8x128xf32>
    %28 = tpu.matmul %27, %18, %cst_10 {dimension_numbers = #tpu.dot_dimension_numbers<[2], [1], [1], [2], [0, 0, 0, 1, 1, 2], [0], [0]>} : vector<2x8x8xbf16>, vector<2x8x128xbf16>, vector<2x8x128xf32> -> vector<2x8x128xf32>
    "tpu.trace_stop"() : () -> ()
    %29 = tpu.reciprocal %26 {approx = true} : vector<2x8x1xf32> -> vector<2x8x1xf32>
    %30 = vector.broadcast %29 : vector<2x8x1xf32> to vector<2x8x128xf32>
    %31 = arith.mulf %28, %30 : vector<2x8x128xf32>
    %32 = vector.shape_cast %31 : vector<2x8x128xf32> to vector<16x128xf32>
    %33 = arith.truncf %32 : vector<16x128xf32> to vector<16x128xbf16>
    %c0_11 = arith.constant 0 : index
    %c0_12 = arith.constant 0 : index
    %34 = vector.load %arg4[%c0_11, %c0_12] : memref<128x128xbf16, #tpu.memory_space<vmem>>, vector<128x128xbf16>
    %cst_13 = arith.constant dense<0.000000e+00> : vector<16x128xf32>
    %35 = tpu.matmul %33, %34, %cst_13 {dimension_numbers = #tpu.dot_dimension_numbers<[1], [0], [0], [1], [0, 0, 1, 1], [], []>} : vector<16x128xbf16>, vector<128x128xbf16>, vector<16x128xf32> -> vector<16x128xf32>
    %c0_14 = arith.constant 0 : index
    %c0_15 = arith.constant 0 : index
    %36 = vector.load %arg5[%c0_14, %c0_15] : memref<1x128xf32, #tpu.memory_space<vmem>>, vector<1x128xf32>
    %37 = vector.broadcast %36 : vector<1x128xf32> to vector<16x128xf32>
    %38 = arith.addf %35, %37 : vector<16x128xf32>
    %39 = vector.shape_cast %38 : vector<16x128xf32> to vector<2x8x128xf32>
    %40 = arith.addf %39, %0 : vector<2x8x128xf32>
    %41 = tpu.iota {dimensions = array<i32: 1>} : vector<1x128xi32>
    %c32_i32 = arith.constant 32 : i32
    %42 = vector.broadcast %c32_i32 : i32 to vector<1x128xi32>
    %43 = arith.cmpi slt, %41, %42 : vector<1x128xi32>
    %44 = arith.extui %43 : vector<1x128xi1> to vector<1x128xi32>
    %45 = arith.sitofp %44 : vector<1x128xi32> to vector<1x128xf32>
    %cst_16 = arith.constant dense<0.000000e+00> : vector<2x8xf32>
    %46 = vector.multi_reduction <add>, %40, %cst_16 [2] : vector<2x8x128xf32> to vector<2x8xf32>
    %47 = vector.shape_cast %46 : vector<2x8xf32> to vector<2x8x1xf32>
    %cst_17 = arith.constant 3.125000e-02 : f32
    %48 = vector.broadcast %cst_17 : f32 to vector<2x8x1xf32>
    %49 = arith.mulf %47, %48 : vector<2x8x1xf32>
    %50 = vector.broadcast %49 : vector<2x8x1xf32> to vector<2x8x128xf32>
    %51 = arith.subf %40, %50 : vector<2x8x128xf32>
    %52 = vector.shape_cast %45 : vector<1x128xf32> to vector<1x1x128xf32>
    %53 = vector.broadcast %52 : vector<1x1x128xf32> to vector<2x8x128xf32>
    %54 = arith.mulf %51, %53 : vector<2x8x128xf32>
    %55 = arith.mulf %54, %54 : vector<2x8x128xf32>
    %cst_18 = arith.constant dense<0.000000e+00> : vector<2x8xf32>
    %56 = vector.multi_reduction <add>, %55, %cst_18 [2] : vector<2x8x128xf32> to vector<2x8xf32>
    %57 = vector.shape_cast %56 : vector<2x8xf32> to vector<2x8x1xf32>
    %cst_19 = arith.constant 3.125000e-02 : f32
    %58 = vector.broadcast %cst_19 : f32 to vector<2x8x1xf32>
    %59 = arith.mulf %57, %58 : vector<2x8x1xf32>
    %cst_20 = arith.constant 9.99999974E-6 : f32
    %60 = vector.broadcast %cst_20 : f32 to vector<2x8x1xf32>
    %61 = arith.addf %59, %60 : vector<2x8x1xf32>
    %62 = math.rsqrt %61 : vector<2x8x1xf32>
    %63 = vector.broadcast %62 : vector<2x8x1xf32> to vector<2x8x128xf32>
    %64 = arith.mulf %54, %63 : vector<2x8x128xf32>
    %c0_21 = arith.constant 0 : index
    %c0_22 = arith.constant 0 : index
    %65 = vector.load %arg6[%c0_21, %c0_22] : memref<1x128xf32, #tpu.memory_space<vmem>>, vector<1x128xf32>
    %66 = vector.shape_cast %65 : vector<1x128xf32> to vector<1x1x128xf32>
    %67 = vector.broadcast %66 : vector<1x1x128xf32> to vector<2x8x128xf32>
    %68 = arith.mulf %64, %67 : vector<2x8x128xf32>
    %c0_23 = arith.constant 0 : index
    %c0_24 = arith.constant 0 : index
    %69 = vector.load %arg7[%c0_23, %c0_24] : memref<1x128xf32, #tpu.memory_space<vmem>>, vector<1x128xf32>
    %70 = vector.shape_cast %69 : vector<1x128xf32> to vector<1x1x128xf32>
    %71 = vector.broadcast %70 : vector<1x1x128xf32> to vector<2x8x128xf32>
    %72 = arith.addf %68, %71 : vector<2x8x128xf32>
    %c0_25 = arith.constant 0 : index
    %c0_26 = arith.constant 0 : index
    %c0_27 = arith.constant 0 : index
    %73 = vector.load %arg8[%c0_25, %c0_26, %c0_27] : memref<2x8x128xf32, #tpu.memory_space<vmem>>, vector<2x8x128xf32>
    tpu.vector_store %arg8[%c0_25, %c0_26, %c0_27], %72 {strides = array<i32>} : memref<2x8x128xf32, #tpu.memory_space<vmem>>, vector<2x8x128xf32>,
    return
  }
  func.func @transform_0(%arg0: i32) -> (i32, i32, i32) {
    %c0_i32 = arith.constant 0 : i32
    %c0_i32_0 = arith.constant 0 : i32
    %c0_i32_1 = arith.constant 0 : i32
    return %arg0, %c0_i32, %c0_i32_0 : i32, i32, i32
  }
  func.func @transform_1(%arg0: i32) -> (i32, i32) {
    %c0_i32 = arith.constant 0 : i32
    %c0_i32_0 = arith.constant 0 : i32
    %c0_i32_1 = arith.constant 0 : i32
    return %c0_i32, %c0_i32_0 : i32, i32
  }
  func.func @transform_2(%arg0: i32) -> (i32, i32) {
    %c0_i32 = arith.constant 0 : i32
    %c0_i32_0 = arith.constant 0 : i32
    %c0_i32_1 = arith.constant 0 : i32
    return %c0_i32, %c0_i32_0 : i32, i32
  }
  func.func @transform_3(%arg0: i32) -> (i32, i32) {
    %c0_i32 = arith.constant 0 : i32
    %c0_i32_0 = arith.constant 0 : i32
    %c0_i32_1 = arith.constant 0 : i32
    return %c0_i32, %c0_i32_0 : i32, i32
  }
  func.func @transform_4(%arg0: i32) -> (i32, i32) {
    %c0_i32 = arith.constant 0 : i32
    %c0_i32_0 = arith.constant 0 : i32
    %c0_i32_1 = arith.constant 0 : i32
    return %c0_i32, %c0_i32_0 : i32, i32
  }
  func.func @transform_5(%arg0: i32) -> (i32, i32) {
    %c0_i32 = arith.constant 0 : i32
    %c0_i32_0 = arith.constant 0 : i32
    %c0_i32_1 = arith.constant 0 : i32
    return %c0_i32, %c0_i32_0 : i32, i32
  }
  func.func @transform_6(%arg0: i32) -> (i32, i32) {
    %c0_i32 = arith.constant 0 : i32
    %c0_i32_0 = arith.constant 0 : i32
    %c0_i32_1 = arith.constant 0 : i32
    return %c0_i32, %c0_i32_0 : i32, i32
  }
  func.func @transform_7(%arg0: i32) -> (i32, i32, i32) {
    %c0_i32 = arith.constant 0 : i32
    %c0_i32_0 = arith.constant 0 : i32
    %c0_i32_1 = arith.constant 0 : i32
    return %arg0, %c0_i32, %c0_i32_0 : i32, i32, i32
  }
}

</mosaic_0001>

<bundles_post_ra>
// kernel: tpu_custom_call.1
= control target key start
LH: loop header
LB: loop body
LE: loop exit
PB: predicated region body
PF: predicated region fallthrough
CT: control target
= control target key end

     0   :  { %12 = vsyncpa [#allocation3], 0  ;;  %s1176_s0 = inlined_call_operand.hbm [shape: f32[2,8,128], index: 0, kind: input, shape index: {}]   ;;  %s1177_s1 = inlined_call_operand.hbm [shape: bf16[128,384], index: 1, kind: input, shape index: {}]   ;;  %s1178_s2 = inlined_call_operand.vmem [shape: f32[1,384], index: 2, kind: input, shape index: {}]   ;;  %s1179_s3 = inlined_call_operand.hbm [shape: bf16[128,128], index: 3, kind: input, shape index: {}]   ;;  %s1180_s4 = inlined_call_operand.vmem [shape: f32[1,128], index: 4, kind: input, shape index: {}]   ;;  %s1181_s5 = inlined_call_operand.vmem [shape: f32[1,128], index: 5, kind: input, shape index: {}]   ;;  %s1182_s6 = inlined_call_operand.vmem [shape: f32[1,128], index: 6, kind: input, shape index: {}]   ;;  %s1183_s7 = inlined_call_operand.hbm [shape: f32[2,8,128], index: 7, kind: output, shape index: {}]  }
   0x1   :  { %13 = vsyncpa [#allocation6], 0 }
   0x2   :  { %14 = vsyncpa [#allocation4], 0  ;;  %s1008_s24 = smov [#allocation5]   ;;  %s914_s28 = scalar_lea.hbm %s1177_s1, 3072 }
   0x3   :  { %s32_s25 = sshll.u32 %s1008_s24, 4  ;;  %p915_p0 = scmp.ne.s32.totalorder %s1177_s1, %s914_s28  ;;  %s33_s25 = int_to_ptr.vmem [resolvable:$true] %s32_s25 }
   0x4   :  { %p918_p1 = scmp.lt.u32.totalorder %s914_s28, %s1177_s1 }
   0x6   :  { %p920_p2 = pnand %p918_p1, %p915_p0 }
   0x8   :  { %923 = shalt.err (!%p920_p2)
}
   0x9   :  { %s924_s10 = scalar_lea.vmem %s33_s25, 3072  ;;  %p929_p4 = scmp.lt.s32.totalorder %s33_s25, %s33_s25 }
   0xa   :  { %p925_p3 = scmp.ne.s32.totalorder %s33_s25, %s924_s10  ;;  %p930_p5 = scmp.lt.s32.totalorder %s924_s10, %s924_s10 }
   0xc   :  { %p931_p6 = por %p930_p5, %p929_p4 }
   0xe   :  { %p932_p7 = pnand %p931_p6, %p925_p3 }
  0x10   :  { %935 = shalt.err (!%p932_p7)
}
  0x11   :  { %s1009_s11 = smov 192   ;;  %s1010_s12 = smov 12  }
  0x12   :  { %38 = dma.hbm_to_vmem [thread:$0]  %s1177_s1, 3072, %s33_s25, [#allocation6], %s1009_s11, %s1009_s11, %s1010_s12  }
  0x13   :  { %s1011_s15 = smov [#allocation2]   ;;  %s936_s19 = scalar_lea.hbm %s1176_s0, 256 }
  0x14   :  { %s20_s16 = sshll.u32 %s1011_s15, 4  ;;  %p937_p8 = scmp.ne.s32.totalorder %s1176_s0, %s936_s19  ;;  %s21_s16 = int_to_ptr.vmem [resolvable:$true] %s20_s16 }
  0x15   :  { %p940_p9 = scmp.lt.u32.totalorder %s936_s19, %s1176_s0 }
  0x17   :  { %p942_p10 = pnand %p940_p9, %p937_p8 }
  0x19   :  { %945 = shalt.err (!%p942_p10)
}
  0x1a   :  { %s946_s24 = scalar_lea.vmem %s21_s16, 256  ;;  %p951_p12 = scmp.lt.s32.totalorder %s21_s16, %s21_s16 }
  0x1b   :  { %p947_p11 = scmp.ne.s32.totalorder %s21_s16, %s946_s24  ;;  %p952_p13 = scmp.lt.s32.totalorder %s946_s24, %s946_s24 }
  0x1d   :  { %p953_p0 = por %p952_p13, %p951_p12 }
  0x1f   :  { %p954_p1 = pnand %p953_p0, %p947_p11 }
  0x21   :  { %957 = shalt.err (!%p954_p1)
}
  0x22   :  { %s1012_s1 = smov 128   ;;  %s1013_s25 = smov 8  }
  0x23   :  { %26 = dma.hbm_to_vmem [thread:$0]  %s1176_s0, 256, %s21_s16, [#allocation3], %s1012_s1, %s1012_s1, %s1013_s25  }
  0x24   :  { %s1014_s28 = smov [#allocation7]   ;;  %s958_s9 = scalar_lea.hbm %s1179_s3, 1024 }
  0x25   :  { %s46_s29 = sshll.u32 %s1014_s28, 4  ;;  %p959_p2 = scmp.ne.s32.totalorder %s1179_s3, %s958_s9  ;;  %s47_s29 = int_to_ptr.vmem [resolvable:$true] %s46_s29 }
  0x26   :  { %p962_p3 = scmp.lt.u32.totalorder %s958_s9, %s1179_s3 }
  0x28   :  { %p964_p4 = pnand %p962_p3, %p959_p2 }
  0x2a   :  { %967 = shalt.err (!%p964_p4)
}
  0x2b   :  { %s968_s14 = scalar_lea.vmem %s47_s29, 1024  ;;  %p973_p6 = scmp.lt.s32.totalorder %s47_s29, %s47_s29 }
  0x2c   :  { %p969_p5 = scmp.ne.s32.totalorder %s47_s29, %s968_s14  ;;  %p974_p7 = scmp.lt.s32.totalorder %s968_s14, %s968_s14 }
  0x2e   :  { %p975_p8 = por %p974_p7, %p973_p6 }
  0x30   :  { %p976_p9 = pnand %p975_p8, %p969_p5 }
  0x32   :  { %979 = shalt.err (!%p976_p9)
}
  0x33   :  { %s1015_s0 = smov 64   ;;  %s1016_s15 = smov 4  }
  0x34   :  { %52 = dma.hbm_to_vmem [thread:$0]  %s1179_s3, 1024, %s47_s29, [#allocation6], %s1015_s0, %s1015_s0, %s1016_s15  }
  0x35   :  { %1002 = dma.done.wait [#allocation3], 256  }
  0x36   :  { %1003 = vsyncadd [#allocation3], 4294967040 }
  0x37   :  { %1004 = dma.done.wait [#allocation6], 4096  }
  0x38   :  { %1005 = vsyncadd [#allocation6], 4294963200  ;;  %v1017_v0 = vmov 0   ;;  %v1018_v1 = vmov 0.0   ;;  %v862_v2 = vld [vmem:[#allocation5 + $0x4] ss:$12 sps:$4 sm:$0xff]   ;;  %v106_v29 = vlaneseq }
  0x39   :  { %281 = vmatprep.mubr.bf16.mxu0 %v1017_v0  ;;  %785 = vmatprep.subr.bf16.mxu1 %v1018_v1  ;;  %v864_v3 = vld [vmem:[#allocation5] ss:$12 sps:$4 sm:$0xff]   ;;  %v865_v4 = vld [vmem:[#allocation5 + $0x1c] ss:$12 sps:$4 sm:$0xff]   ;;  %v867_v5 = vld [vmem:[#allocation5 + $0x18] ss:$12 sps:$4 sm:$0xff]  }
  0x3a   :  { %249 = vmatprep.subr.bf16.mxu0 %v862_v2  ;;  %v868_v6 = vld [vmem:[#allocation5 + $0x34] ss:$12 sps:$4 sm:$0xff]   ;;  %v870_v7 = vld [vmem:[#allocation5 + $0x30] ss:$12 sps:$4 sm:$0xff]   ;;  %v871_v8 = vld [vmem:[#allocation5 + $0x4c] ss:$12 sps:$4 sm:$0xff]  }
  0x3b   :  { %250 = vmatpush1.bf16.msra.mxu0 %v864_v3  ;;  %v873_v9 = vld [vmem:[#allocation5 + $0x48] ss:$12 sps:$4 sm:$0xff]   ;;  %v874_v10 = vld [vmem:[#allocation5 + $0x64] ss:$12 sps:$4 sm:$0xff]   ;;  %v887_v12 = vld [vmem:[#allocation5 + $0x20] ss:$12 sps:$4 sm:$0xff]  }
  0x3c   :  { %251 = vmatprep.subr.bf16.mxu0 %v865_v4  ;;  %v886_v11 = vld [vmem:[#allocation5 + $0x8] ss:$12 sps:$4 sm:$0xff]   ;;  %v876_v13 = vld [vmem:[#allocation5 + $0x60] ss:$12 sps:$4 sm:$0xff]   ;;  %v888_v15 = vld [vmem:[#allocation5 + $0x38] ss:$12 sps:$4 sm:$0xff]  }
  0x3d   :  { %786 = vmatpush3.bf16.msra.mxu1 %v886_v11  ;;  %v877_v14 = vld [vmem:[#allocation5 + $0x7c] ss:$12 sps:$4 sm:$0xff]   ;;  %v879_v16 = vld [vmem:[#allocation5 + $0x78] ss:$12 sps:$4 sm:$0xff]   ;;  %v880_v17 = vld [vmem:[#allocation5 + $0x94] ss:$12 sps:$4 sm:$0xff]  }
  0x3e   :  { %787 = vmatprep.subr.bf16.mxu1 %v1018_v1  ;;  %v889_v18 = vld [vmem:[#allocation5 + $0x50] ss:$12 sps:$4 sm:$0xff]   ;;  %v883_v20 = vld [vmem:[#allocation5 + $0xac] ss:$12 sps:$4 sm:$0xff]   ;;  %v890_v21 = vld [vmem:[#allocation5 + $0x68] ss:$12 sps:$4 sm:$0xff]  }
  0x3f   :  { %252 = vmatpush1.bf16.msra.mxu0 %v867_v5  ;;  %v882_v19 = vld [vmem:[#allocation5 + $0x90] ss:$12 sps:$4 sm:$0xff]   ;;  %v885_v22 = vld [vmem:[#allocation5 + $0xa8] ss:$12 sps:$4 sm:$0xff]   ;;  %v891_v26 = vld [vmem:[#allocation5 + $0x80] ss:$12 sps:$4 sm:$0xff]  }
  0x40   :  { %253 = vmatprep.subr.bf16.mxu0 %v868_v6  ;;  %v1104_v23 = vld [vmem:[#allocation2] sm:$0xff]  ;;  %v1106_v24 = vld [vmem:[#allocation2 + $0x8] sm:$0xff]  ;;  %vm1019_vm0 = vmmov 0   ;;  %v107_v30 = vshrl.u32 %v106_v29, 7  ;;  %vm445_vm1 = vcmask 1043456   ;;  %vm421_vm2 = vcmask 64512  }
  0x41   :  { %788 = vmatpush3.bf16.msra.mxu1 %v887_v12  ;;  %v71_v25 = vpack.c.bf16 %v1106_v24, %v1104_v23  ;;  %v892_v27 = vld [vmem:[#allocation5 + $0x98] ss:$12 sps:$4 sm:$0xff]   ;;  %v893_v28 = vld [vmem:[#allocation5 + $0xb0] ss:$12 sps:$4 sm:$0xff]   ;;  %801 = vmatprep.mubr.msk.bf16.mxu1 %vm1019_vm0, %v1018_v1  ;;  %s1020_s23 = smov [#allocation8]  }
  0x42   :  { %789 = vmatprep.subr.bf16.mxu1 %v1018_v1  ;;  %v112_v31 = vsub.s32 1, %v107_v30  ;;  %v104_v32 = vld [vmem:[%s1178_s2] sm:$0x7]  ;;  %v108_v33 = vsub.s32 0, %v107_v30  ;;  %v116_v50 = vsub.s32 2, %v107_v30  ;;  %s708_s24 = sshll.u32 %s1020_s23, 4  ;;  %s709_s24 = int_to_ptr.vmem [resolvable:$true] %s708_s24 }
  0x43   :  { %254 = vmatpush1.bf16.msra.mxu0 %v870_v7  ;;  %v900_v30 = vld [vmem:[#allocation7 + $0x30] sm:$0xff]   ;;  %s980_s26 = scalar_lea.vmem %s709_s24, 256  ;;  %p985_p11 = scmp.lt.s32.totalorder %s709_s24, %s709_s24 }
  0x44   :  { %255 = vmatprep.subr.bf16.mxu0 %v871_v8  ;;  %v113_v34 = vrot.slane %v104_v32, %v112_v31  ;;  %v109_v35 = vrot.slane %v104_v32, %v108_v33  ;;  %v117_v51 = vrot.slane %v104_v32, %v116_v50  ;;  %v901_v31 = vld [vmem:[#allocation7 + $0x38] sm:$0xff]   ;;  %p981_p10 = scmp.ne.s32.totalorder %s709_s24, %s980_s26  ;;  %p986_p12 = scmp.lt.s32.totalorder %s980_s26, %s980_s26 }
  0x45   :  { %790 = vmatpush3.bf16.msra.mxu1 %v888_v15 }
  0x46   :  { %791 = vmatprep.subr.bf16.mxu1 %v1018_v1  ;;  %p987_p13 = por %p986_p12, %p985_p11 }
  0x47   :  { %256 = vmatpush1.bf16.msra.mxu0 %v873_v9 }
  0x48   :  { %257 = vmatprep.subr.bf16.mxu0 %v874_v10  ;;  %p988_p0 = pnand %p987_p13, %p981_p10 }
  0x49   :  { %792 = vmatpush3.bf16.msra.mxu1 %v889_v18 }
  0x4a   :  { %793 = vmatprep.subr.bf16.mxu1 %v1018_v1 }
  0x4b   :  { %258 = vmatpush1.bf16.msra.mxu0 %v876_v13 }
  0x4c   :  { %259 = vmatprep.subr.bf16.mxu0 %v877_v14 }
  0x4d   :  { %794 = vmatpush3.bf16.msra.mxu1 %v890_v21  ;;  %v894_v21 = vld [vmem:[#allocation7] sm:$0xff]  }
  0x4e   :  { %795 = vmatprep.subr.bf16.mxu1 %v1018_v1 }
  0x4f   :  { %260 = vmatpush1.bf16.msra.mxu0 %v879_v16 }
  0x50   :  { %261 = vmatprep.subr.bf16.mxu0 %v880_v17 }
  0x51   :  { %796 = vmatpush3.bf16.msra.mxu1 %v891_v26  ;;  %v897_v26 = vld [vmem:[#allocation7 + $0x18] sm:$0xff]  }
  0x52   :  { %797 = vmatprep.subr.bf16.mxu1 %v1018_v1 }
  0x53   :  { %262 = vmatpush1.bf16.msra.mxu0 %v882_v19 }
  0x54   :  { %263 = vmatprep.subr.bf16.mxu0 %v883_v20 }
  0x55   :  { %798 = vmatpush3.bf16.msra.mxu1 %v892_v27  ;;  %v898_v27 = vld [vmem:[#allocation7 + $0x20] sm:$0xff]  }
  0x56   :  { %799 = vmatprep.subr.bf16.mxu1 %v1018_v1 }
  0x57   :  { %264 = vmatpush1.bf16.msra.mxu0 %v885_v22  ;;  %v895_v22 = vld [vmem:[#allocation7 + $0x8] sm:$0xff]  }
  0x58   :  { %829 = vmatprep.subr.bf16.mxu0 %v1018_v1 }
  0x59   :  { %800 = vmatpush3.bf16.msra.mxu1 %v893_v28  ;;  %v899_v28 = vld [vmem:[#allocation7 + $0x28] sm:$0xff]  }
  0x5a   :  { %282 = vmatmul.mubr.bf16.vlgmr.msra.gmra.mrb[0].mxu0 %v71_v25  ;;  %805 = vmatprep.subr.bf16.mxu1 %v1018_v1 }
  0x5b   :  { %845 = vmatprep.mubr.msk.bf16.mxu0 %vm1019_vm0, %v1018_v1  ;;  %830 = vmatpush3.bf16.msra.mxu0 %v894_v21 }
  0x5c   :  { %802 = vmatmul.mubr.bf16.vlgmr.msra.gmra.mrb[0].mxu1 %v71_v25  ;;  %831 = vmatprep.subr.bf16.mxu0 %v1018_v1  ;;  %v896_v25 = vld [vmem:[#allocation7 + $0x10] sm:$0xff]  }
  0x5d   :  { %807 = vmatprep.mubr.msk.bf16.mxu1 %vm1019_vm0, %v1018_v1 }
  0x5f   :  { %832 = vmatpush3.bf16.msra.mxu0 %v895_v22 }
  0x60   :  { %833 = vmatprep.subr.bf16.mxu0 %v1018_v1 }
  0x63   :  { %834 = vmatpush3.bf16.msra.mxu0 %v896_v25 }
  0x64   :  { %835 = vmatprep.subr.bf16.mxu0 %v1018_v1 }
  0x67   :  { %836 = vmatpush3.bf16.msra.mxu0 %v897_v26 }
  0x68   :  { %837 = vmatprep.subr.bf16.mxu0 %v1018_v1 }
  0x6b   :  { %838 = vmatpush3.bf16.msra.mxu0 %v898_v27 }
  0x6c   :  { %839 = vmatprep.subr.bf16.mxu0 %v1018_v1 }
  0x6f   :  { %840 = vmatpush3.bf16.msra.mxu0 %v899_v28 }
  0x70   :  { %841 = vmatprep.subr.bf16.mxu0 %v1018_v1 }
  0x73   :  { %842 = vmatpush3.bf16.msra.mxu0 %v900_v30 }
  0x74   :  { %843 = vmatprep.subr.bf16.mxu0 %v1018_v1 }
  0x77   :  { %844 = vmatpush3.bf16.msra.mxu0 %v901_v31 }
 0x12d   :  { %v283_v36 = vpop.f32.mrb[0].mxu0 }
 0x12e   :  { %v285_v37 = vpop.f32.mrb[1].mxu0  ;;  %v284_v40 = vadd.f32 %v283_v36, %v109_v35 }
 0x12f   :  { %v286_v38 = vadd.f32 %v285_v37, %v113_v34  ;;  %v287_v39 = vpop.f32.mrb[2].mxu0  ;;  %v326_v52 = vpop.f32.mrb[0].mxu1 }
 0x130   :  { %v289_v41 = vpop.f32.mrb[3].mxu0  ;;  %v333_v43 = vmul.f32 0.25, %v284_v40  ;;  %v288_v46 = vadd.f32 %v287_v39, %v109_v35  ;;  %v327_v53 = vadd.f32 %v326_v52, %v117_v51  ;;  %v803_v54 = vpop.f32.mrb[1].mxu1 }
 0x131   :  { %v337_v42 = vpack.c.bf16 %v286_v38, %v286_v38  ;;  %v290_v44 = vadd.f32 %v289_v41, %v113_v34  ;;  %v329_v55 = vpop.f32.mrb[2].mxu1 }
 0x132   :  { %v335_v45 = vpack.c.bf16 %v333_v43, %v333_v43  ;;  %v334_v48 = vmul.f32 0.25, %v288_v46  ;;  %v339_v56 = vpack.c.bf16 %v327_v53, %v327_v53  ;;  %v330_v57 = vadd.f32 %v329_v55, %v117_v51  ;;  %v804_v58 = vpop.f32.mrb[3].mxu1 }
 0x133   :  { %806 = vmatpush3.bf16.xpose.msra.mxu1 %v337_v42  ;;  %v338_v47 = vpack.c.bf16 %v290_v44, %v290_v44 }
 0x134   :  { %811 = vmatprep.subr.bf16.mxu1 %v1018_v1  ;;  %v336_v49 = vpack.c.bf16 %v334_v48, %v334_v48  ;;  %v447_v59 = vsel %vm445_vm1, %v339_v56, 0  ;;  %v340_v60 = vpack.c.bf16 %v330_v57, %v330_v57  ;;  %v655_v56 = vand.u32 127, %v106_v29 }
 0x136   :  { %v493_v61 = vsel %vm445_vm1, %v340_v60, 0  ;;  %vm656_vm3 = vcmp.lt.s32.totalorder %v655_v56, 32 }
 0x137   :  { %v756_v60 = vsel %vm656_vm3, 1.0, %v1018_v1 }
 0x13a   :  { %808 = vmatmul.mubr.bf16.vlgmr.msra.gmra.mrb[4].mxu1 %v335_v45 }
 0x13b   :  { %812 = vmatpush3.bf16.xpose.msra.mxu1 %v338_v47  ;;  %813 = vmatprep.mubr.msk.bf16.mxu1 %vm1019_vm0, %v1018_v1  ;;  %v747_v47 = vld [vmem:[%s1180_s4] ss:$0 sm:$0xff] }
 0x13c   :  { %817 = vmatprep.subr.bf16.mxu1 %v1018_v1 }
 0x142   :  { %814 = vmatmul.mubr.bf16.vlgmr.msra.gmra.mrb[8].mxu1 %v336_v49 }
 0x143   :  { %819 = vmatprep.mubr.msk.bf16.mxu1 %vm1019_vm0, %v1018_v1  ;;  %818 = vmatpush3.bf16.msra.mxu1 %v447_v59 }
 0x144   :  { %823 = vmatprep.subr.bf16.mxu1 %v1018_v1 }
 0x20d   :  { %v375_v62 = vpop.f32.mrb[4].mxu1 }
 0x20e   :  { %v809_v63 = vpop.f32.mrb[5].mxu1  ;;  %v422_v0 = vsel %vm421_vm2, %v375_v62, -inf }
 0x20f   :  { %423 = vmax.xlane.f32.xlu0 %v422_v0  ;;  %v378_v2 = vpop.f32.mrb[6].mxu1 }
 0x210   :  { %v810_v3 = vpop.f32.mrb[7].mxu1 }
 0x215   :  { %v415_v4 = vpop.f32.mrb[8].mxu1 }
 0x216   :  { %v815_v5 = vpop.f32.mrb[9].mxu1  ;;  %v425_v6 = vsel %vm421_vm2, %v415_v4, -inf }
 0x217   :  { %426 = vmax.xlane.f32.xlu0 %v425_v6  ;;  %v418_v7 = vpop.f32.mrb[10].mxu1 }
 0x218   :  { %v816_v8 = vpop.f32.mrb[11].mxu1 }
 0x29c   :  { %v424_v9 = vpop.xlane.xlu0 %423 }
 0x29d   :  { %v428_v10 = vsub.f32 %v375_v62, %v424_v9 }
 0x29f   :  { %v430_v11 = vmul.f32 1.442695, %v428_v10 }
 0x2a1   :  { %902 = vpow2.f32 %v430_v11  ;;  %v758_v11 = vld [vmem:[%s1182_s6] ss:$0 sm:$0xff] }
 0x2a4   :  { %v427_v12 = vpop.xlane.xlu0 %426 }
 0x2a5   :  { %v429_v13 = vsub.f32 %v415_v4, %v427_v12 }
 0x2a7   :  { %v432_v14 = vmul.f32 1.442695, %v429_v13 }
 0x2a9   :  { %904 = vpow2.f32 %v432_v14 }
 0x2ab   :  { %v903_v15 = vpop.eup %902 }
 0x2ac   :  { %v434_v16 = vsel %vm421_vm2, %v903_v15, 0.0  ;;  %v440_v17 = vpack.c.bf16 %v903_v15, %v903_v15 }
 0x2ad   :  { %435 = vadd.xlane.f32.xlu1 %v434_v16 }
 0x2ae   :  { %820 = vmatmul.mubr.msk.bf16.vlgmr.msra.gmra.mrb[12].mxu1 %vm421_vm2, %v440_v17 }
 0x2af   :  { %824 = vmatpush3.bf16.msra.mxu1 %v493_v61  ;;  %825 = vmatprep.mubr.msk.bf16.mxu1 %vm1019_vm0, %v1018_v1  ;;  %v757_v1 = vld [vmem:[%s1181_s5] ss:$0 sm:$0xff] }
 0x2b3   :  { %v905_v18 = vpop.eup %904 }
 0x2b4   :  { %v437_v19 = vsel %vm421_vm2, %v905_v18, 0.0  ;;  %v441_v20 = vpack.c.bf16 %v905_v18, %v905_v18 }
 0x2b5   :  { %438 = vadd.xlane.f32.xlu1 %v437_v19 }
 0x2b6   :  { %826 = vmatmul.mubr.msk.bf16.vlgmr.msra.gmra.mrb[16].mxu1 %vm421_vm2, %v441_v20 }
 0x33a   :  { %v436_v32 = vpop.xlane.xlu1 %435 }
 0x33b   :  { %906 = vrcp.f32 %v436_v32 }
 0x342   :  { %v439_v33 = vpop.xlane.xlu1 %438 }
 0x343   :  { %908 = vrcp.f32 %v439_v33 }
 0x345   :  { %v907_v38 = vpop.eup %906 }
 0x34d   :  { %v909_v39 = vpop.eup %908 }
 0x381   :  { %v483_v34 = vpop.f32.mrb[12].mxu1 }
 0x382   :  { %v821_v35 = vpop.f32.mrb[13].mxu1  ;;  %v537_v41 = vmul.f32 %v907_v38, %v483_v34 }
 0x383   :  { %v486_v36 = vpop.f32.mrb[14].mxu1 }
 0x384   :  { %v822_v37 = vpop.f32.mrb[15].mxu1 }
 0x389   :  { %v529_v40 = vpop.f32.mrb[16].mxu1 }
 0x38a   :  { %v538_v42 = vmul.f32 %v909_v39, %v529_v40  ;;  %v827_v43 = vpop.f32.mrb[17].mxu1 }
 0x38b   :  { %v532_v44 = vpop.f32.mrb[18].mxu1 }
 0x38c   :  { %v539_v45 = vpack.c.bf16 %v538_v42, %v537_v41  ;;  %v828_v46 = vpop.f32.mrb[19].mxu1 }
 0x38e   :  { %846 = vmatmul.mubr.bf16.vlgmr.msra.gmra.mrb[4].mxu0 %v539_v45 }
 0x461   :  { %v645_v48 = vpop.f32.mrb[4].mxu0 }
 0x462   :  { %v646_v49 = vadd.f32 %v747_v47, %v645_v48  ;;  %v847_v50 = vpop.f32.mrb[5].mxu0 }
 0x463   :  { %v648_v51 = vpop.f32.mrb[6].mxu0 }
 0x464   :  { %v649_v52 = vadd.f32 %v747_v47, %v648_v51  ;;  %v848_v53 = vpop.f32.mrb[7].mxu0  ;;  %v652_v54 = vadd.f32 %v646_v49, %v1104_v23 }
 0x466   :  { %659 = vadd.xlane.f32.xlu0 %v652_v54  ;;  %v653_v55 = vadd.f32 %v649_v52, %v1106_v24 }
 0x468   :  { %661 = vadd.xlane.f32.xlu1 %v653_v55 }
 0x4f3   :  { %v660_v57 = vpop.xlane.xlu0 %659 }
 0x4f4   :  { %v663_v58 = vmul.f32 0.03125, %v660_v57 }
 0x4f5   :  { %v662_v59 = vpop.xlane.xlu1 %661 }
 0x4f6   :  { %v665_v61 = vsub.f32 %v652_v54, %v663_v58  ;;  %v664_v62 = vmul.f32 0.03125, %v662_v59 }
 0x4f8   :  { %v666_v63 = vsub.f32 %v653_v55, %v664_v62  ;;  %v667_v0 = vmul.f32 %v756_v60, %v665_v61 }
 0x4fa   :  { %v669_v2 = vmul.f32 %v667_v0, %v667_v0  ;;  %v668_v3 = vmul.f32 %v756_v60, %v666_v63 }
 0x4fc   :  { %671 = vadd.xlane.f32.xlu0 %v669_v2  ;;  %v670_v23 = vmul.f32 %v668_v3, %v668_v3 }
 0x4fe   :  { %673 = vadd.xlane.f32.xlu1 %v670_v23 }
 0x589   :  { %v672_v4 = vpop.xlane.xlu0 %671 }
 0x58a   :  { %v675_v24 = vmul.f32 0.03125, %v672_v4 }
 0x58b   :  { %v674_v5 = vpop.xlane.xlu1 %673 }
 0x58c   :  { %v677_v6 = vadd.f32 1e-05, %v675_v24  ;;  %v676_v29 = vmul.f32 0.03125, %v674_v5 }
 0x58e   :  { %910 = vrsqrt.f32 %v677_v6  ;;  %v678_v7 = vadd.f32 1e-05, %v676_v29 }
 0x590   :  { %912 = vrsqrt.f32 %v678_v7 }
 0x598   :  { %v911_v8 = vpop.eup %910 }
 0x599   :  { %v681_v9 = vmul.f32 %v911_v8, %v667_v0 }
 0x59a   :  { %v913_v10 = vpop.eup %912 }
 0x59b   :  { %v682_v12 = vmul.f32 %v913_v10, %v668_v3  ;;  %v690_v13 = vmul.f32 %v757_v1, %v681_v9 }
 0x59d   :  { %v691_v14 = vmul.f32 %v757_v1, %v682_v12  ;;  %v699_v15 = vadd.f32 %v758_v11, %v690_v13 }
 0x59f   :  { %v700_v16 = vadd.f32 %v758_v11, %v691_v14  ;;  %701 = vst [vmem:[#allocation8] sm:$0xff] %v699_v15 }
 0x5a1   :  { %702 = vst [vmem:[#allocation8 + $0x8] sm:$0xff] %v700_v16 }
 0x5a2   :  { %991 = shalt.err (!%p988_p0)
}
 0x5a3   :  { %s992_s6 = scalar_lea.hbm %s1183_s7, 256 }
 0x5a4   :  { %p993_p1 = scmp.ne.s32.totalorder %s1183_s7, %s992_s6  ;;  %p996_p2 = scmp.lt.u32.totalorder %s992_s6, %s1183_s7 }
 0x5a6   :  { %p998_p3 = pnand %p996_p2, %p993_p1 }
 0x5a8   :  { %1001 = shalt.err (!%p998_p3)
}
 0x5a9   :  { %714 = dma.vmem_to_hbm [thread:$0]  %s709_s24, 256, %s1183_s7, [#allocation4], %s1012_s1, %s1012_s1, %s1013_s25  }
 0x5aa   :  { %1006 = dma.done.wait [#allocation4], 256  }
 0x5ab   :  { %1007 = vsyncadd [#allocation4], 4294967040 }
 0x5ac   :  { %718 = vsyncpa [#allocation3], 1 }
 0x5ad   :  { %719 = vsyncpa [#allocation6], 1 }
 0x5ae   :  { %720 = vsyncpa [#allocation4], 1 }

</bundles_post_ra>
